<compile_context>
chip_gen: v5e
topology: v5e:2x2
jax: 0.10.0
libtpu: 0.0.40
codegen_flags: <defaults>
</compile_context>

<pallas_src>
import jax
import jax.numpy as jnp
from jax.experimental import pallas as pl
from jax.experimental.pallas import tpu as pltpu


# ----------------------------------------------------------------------------
# Hardware queries (best-effort; safe fallbacks)
# ----------------------------------------------------------------------------
def _vmem_capacity_bytes():
    try:
        return int(pltpu.get_tpu_info().vmem_capacity_bytes)
    except Exception:
        return 64 * 1024 * 1024  # conservative fallback (v7x per-TC VMEM)


def _vmem_limit_bytes():
    cap = _vmem_capacity_bytes()
    # leave headroom for compiler scratch; never request more than 96 MiB
    return max(16 * 1024 * 1024, min(cap - 16 * 1024 * 1024, 96 * 1024 * 1024))


def _is_multi_tensorcore_chip():
    """True only if the chip reports >= 2 TensorCores (v7x). Best-effort."""
    try:
        info = pltpu.get_tpu_info()
        for attr in ("num_tensorcores", "tensorcore_count", "num_cores", "core_count"):
            v = getattr(info, attr, None)
            if v is not None:
                return int(v) >= 2
    except Exception:
        pass
    return False


# ----------------------------------------------------------------------------
# Tiling helpers
# ----------------------------------------------------------------------------
_ROW_CAP = 2048   # sublane-dim tile cap (multiple of 8)
_COL_CAP = 2048   # lane-dim tile cap (multiple of 128)


def _round_down(n, unit):
    return (n // unit) * unit


def _round_up(n, unit):
    return -(-n // unit) * unit


def _tile_sizes(R, D, x_bytes, out_bytes):
    """Pick (tm, tn): (8,128)-aligned (or full-extent for tiny dims), sized to VMEM."""
    # Lane (column) tile: full extent if D < 128, else a multiple of 128.
    if D < 128:
        tn = D
    else:
        tn = max(128, min(_COL_CAP, _round_down(D, 128)))

    # Row tile: bounded by a VMEM budget for the double-buffered x/out tiles.
    budget = int(0.35 * _vmem_capacity_bytes())          # headroom for scratch/gamma
    per_row_bytes = 2 * tn * (x_bytes + out_bytes)        # 2x = double buffering
    rows_by_budget = max(8, _round_down(budget // max(per_row_bytes, 1), 8))

    if R < 8:
        tm = R                                            # full-extent block is legal
    else:
        tm = max(8, min(_ROW_CAP, _round_down(R, 8), rows_by_budget))
    return tm, tn


# ----------------------------------------------------------------------------
# Kernel:  out_tile = x_tile * gamma_tile   (gamma broadcast over rows)
# ----------------------------------------------------------------------------
def _layer_scale_kernel(x_ref, g_ref, o_ref):
    # Cast-in-kernel: VPU has plenty of slack on this HBM-bound op; this avoids a
    # wrapper-side astype that would add a full HBM round-trip of x.
    o_ref[...] = x_ref[...].astype(o_ref.dtype) * g_ref[...]


def layer_scale(x, gamma):
    """LayerScale forward: x * gamma, gamma broadcast along the last dimension."""
    orig_shape = x.shape
    D = orig_shape[-1]
    assert gamma.shape == (D,), (gamma.shape, D)

    R = 1
    for s in orig_shape[:-1]:
        R *= s
    R = max(R, 1)

    # Match torch eager promotion semantics (f32 gamma promotes bf16 x to f32 output).
    out_dtype = jnp.result_type(x.dtype, gamma.dtype)

    x2d = x.reshape(R, D)                                  # native dtype, no copy of x
    g2 = jnp.asarray(gamma, out_dtype).reshape(1, D)       # tiny; cast is free

    x_bytes = jnp.dtype(x.dtype).itemsize
    out_bytes = jnp.dtype(out_dtype).itemsize
    tm, tn = _tile_sizes(R, D, x_bytes, out_bytes)

    # Only on multi-TensorCore chips (v7x): expose >= 2 parallel grid steps for a
    # single-tile problem. Prefer a row split (contiguous per-core output DMA).
    if pl.cdiv(R, tm) * pl.cdiv(D, tn) < 2 and _is_multi_tensorcore_chip():
        if R >= 16:
            tm = min(tm, max(8, _round_up(pl.cdiv(R, 2), 8)))
        elif D >= 256:
            tn = min(tn, max(128, _round_up(pl.cdiv(D, 2), 128)))

    n_row = pl.cdiv(R, tm)
    n_col = pl.cdiv(D, tn)

    # Grid ordering: columns slow, rows fast -> gamma's block index (0, j) is constant
    # across consecutive steps, so Pallas skips its re-DMA; x/out tiles stay lane-dense.
    out = pl.pallas_call(
        _layer_scale_kernel,
        out_shape=jax.ShapeDtypeStruct((R, D), out_dtype),
        grid=(n_col, n_row),
        in_specs=[
            pl.BlockSpec((tm, tn), lambda j, i: (i, j)),
            pl.BlockSpec((1, tn), lambda j, i: (0, j)),
        ],
        out_specs=pl.BlockSpec((tm, tn), lambda j, i: (i, j)),
        compiler_params=pltpu.CompilerParams(
            dimension_semantics=("parallel", "parallel"),
            vmem_limit_bytes=_vmem_limit_bytes(),
        ),
    )(x2d, g2)

    return out.reshape(orig_shape) if out_dtype == x.dtype or True else out


# ----------------------------------------------------------------------------
# Module-style wrapper mirroring the PyTorch LayerScale
# ----------------------------------------------------------------------------
class LayerScale:
    """Pallas-TPU equivalent of the PyTorch LayerScale module."""

    def __init__(self, dim, init_values=1e-5, inplace=False):
        # `inplace` in torch only changes buffer aliasing; the math is identical.
        self.inplace = inplace
        self.gamma = init_values * jnp.ones((dim,), jnp.float32)

    def __call__(self, x):
        return layer_scale(x, self.gamma)


# ----------------------------------------------------------------------------
if __name__ == "__main__":
    key = jax.random.PRNGKey(0)
    kx, kg, kx2 = jax.random.split(key, 3)

    # Token-shaped input like the transformer blocks LayerScale is attached to:
    # batch=2, seq=8, dim=256.
    B, N, D = 2, 8, 256
    x = jax.random.normal(kx, (B, N, D), jnp.float32)

    # Module with its default parameter state: gamma = init_values * ones(dim).
    ls = LayerScale(D, init_values=1e-5)
    out = jax.block_until_ready(jax.jit(ls)(x))
    ref = x * ls.gamma
    assert out.shape == x.shape, out.shape
    assert bool(jnp.all(jnp.isfinite(out)))
    assert jnp.allclose(out, ref, rtol=1e-6, atol=1e-6)

    # Non-trivial gamma on the same aligned shape.
    gamma_rand = jax.random.normal(kg, (D,), jnp.float32)
    out1 = jax.block_until_ready(jax.jit(layer_scale)(x, gamma_rand))
    assert jnp.allclose(out1, x * gamma_rand, rtol=1e-6, atol=1e-6)

    # Ragged shape + mixed dtype (bf16 x, f32 gamma): exercises cdiv edge masking
    # and the in-kernel cast path (no wrapper-side upcast of x).
    D2 = 200
    gamma2 = jax.random.normal(kg, (D2,), jnp.float32)
    x2 = jax.random.normal(kx2, (3, 5, D2), jnp.bfloat16)
    out2 = jax.block_until_ready(jax.jit(layer_scale)(x2, gamma2))
    ref2 = x2.astype(jnp.float32) * gamma2
    assert out2.dtype == ref2.dtype, (out2.dtype, ref2.dtype)
    assert out2.shape == x2.shape
    assert jnp.allclose(out2, ref2, rtol=1e-5, atol=1e-5)

    print("KERNEL_OK")
</pallas_src>

<mosaic_0001>
module attributes {stable_mosaic.version = 11 : i64} {
  func.func @_layer_scale_kernel(%arg0: i32, %arg1: i32, %arg2: memref<16x256xf32, #tpu.memory_space<vmem>>, %arg3: memref<1x256xf32, #tpu.memory_space<vmem>>, %arg4: memref<16x256xf32, #tpu.memory_space<vmem>>) attributes {dimension_semantics = [#tpu.dimension_semantics<parallel>, #tpu.dimension_semantics<parallel>], iteration_bounds = array<i64: 1, 1>, scalar_prefetch = 0 : i64, scratch_operands = 0 : i64, tpu.core_type = #tpu.core_type<tc>, window_params = [{transform_indices = @transform_0, window_bounds = array<i64: 16, 256>}, {transform_indices = @transform_1, window_bounds = array<i64: 1, 256>}, {transform_indices = @transform_2, window_bounds = array<i64: 16, 256>}]} {
    %c0 = arith.constant 0 : index
    %c0_0 = arith.constant 0 : index
    %0 = vector.load %arg2[%c0, %c0_0] : memref<16x256xf32, #tpu.memory_space<vmem>>, vector<16x256xf32>
    %c0_1 = arith.constant 0 : index
    %c0_2 = arith.constant 0 : index
    %1 = vector.load %arg3[%c0_1, %c0_2] : memref<1x256xf32, #tpu.memory_space<vmem>>, vector<1x256xf32>
    %2 = vector.broadcast %1 : vector<1x256xf32> to vector<16x256xf32>
    %3 = arith.mulf %0, %2 : vector<16x256xf32>
    %c0_3 = arith.constant 0 : index
    %c0_4 = arith.constant 0 : index
    %4 = vector.load %arg4[%c0_3, %c0_4] : memref<16x256xf32, #tpu.memory_space<vmem>>, vector<16x256xf32>
    tpu.vector_store %arg4[%c0_3, %c0_4], %3 {strides = array<i32>} : memref<16x256xf32, #tpu.memory_space<vmem>>, vector<16x256xf32>,
    return
  }
  func.func @transform_0(%arg0: i32, %arg1: i32) -> (i32, i32) {
    %c0_i32 = arith.constant 0 : i32
    return %arg1, %arg0 : i32, i32
  }
  func.func @transform_1(%arg0: i32, %arg1: i32) -> (i32, i32) {
    %c0_i32 = arith.constant 0 : i32
    %c0_i32_0 = arith.constant 0 : i32
    return %c0_i32, %arg0 : i32, i32
  }
  func.func @transform_2(%arg0: i32, %arg1: i32) -> (i32, i32) {
    %c0_i32 = arith.constant 0 : i32
    return %arg1, %arg0 : i32, i32
  }
}

</mosaic_0001>

<bundles_post_ra>
// kernel: _unnamed_function_.1
= control target key start
LH: loop header
LB: loop body
LE: loop exit
PB: predicated region body
PF: predicated region fallthrough
CT: control target
= control target key end

     0   :  { %7 = vsyncpa [#allocation3], 0  ;;  %s149_s0 = inlined_call_operand.hbm [shape: f32[16,256], index: 0, kind: input, shape index: {}]   ;;  %s150_s1 = inlined_call_operand.vmem [shape: f32[1,256], index: 1, kind: input, shape index: {}]   ;;  %s151_s2 = inlined_call_operand.hbm [shape: f32[16,256], index: 2, kind: output, shape index: {}]  }
   0x1   :  { %8 = vsyncpa [#allocation4], 0  ;;  %s13_s11 = sshll.u32 %s149_s0, 4  ;;  %s121_s12 = smov [#allocation2]   ;;  %s14_s11 = int_to_ptr.hbm [resolvable:$true] %s13_s11 }
   0x2   :  { %s15_s13 = sshll.u32 %s121_s12, 4  ;;  %s122_s14 = smov 256   ;;  %s16_s13 = int_to_ptr.vmem [resolvable:$true] %s15_s13 }
   0x3   :  { %s123_s15 = smov 16  }
   0x4   :  { %21 = dma.hbm_to_vmem [thread:$0]  %s14_s11, 512, %s16_s13, [#allocation3], %s122_s14, %s122_s14, %s123_s15  }
   0x5   :  { %117 = dma.done.wait [#allocation3], 512  }
   0x6   :  { %118 = vsyncadd [#allocation3], 4294966784  ;;  %v28_v0 = vld [vmem:[#allocation2] sm:$0xff]  ;;  %v29_v2 = vld [vmem:[#allocation2 + $0x8] sm:$0xff]  ;;  %s124_s0 = smov [#allocation5]   ;;  %s52_s21 = sshll.u32 %s151_s2, 4  ;;  %s53_s21 = int_to_ptr.hbm [resolvable:$true] %s52_s21 }
   0x7   :  { %v32_v1 = vld [vmem:[%s150_s1] sm:$0x3]  ;;  %v30_v5 = vld [vmem:[#allocation2 + $0x10] sm:$0xff]  ;;  %v31_v6 = vld [vmem:[#allocation2 + $0x18] sm:$0xff]  ;;  %s50_s18 = sshll.u32 %s124_s0, 4  ;;  %s51_s18 = int_to_ptr.vmem [resolvable:$true] %s50_s18 }
   0x8   :  { %v34_v3 = vperm.slane %v32_v1, 0  ;;  %v35_v4 = vperm.slane %v32_v1, 1 }
   0xa   :  { %v38_v7 = vmul.f32 %v34_v3, %v28_v0  ;;  %v39_v8 = vmul.f32 %v35_v4, %v29_v2  ;;  %v40_v9 = vmul.f32 %v34_v3, %v30_v5  ;;  %v41_v10 = vmul.f32 %v35_v4, %v31_v6 }
   0xc   :  { %42 = vst [vmem:[#allocation5] sm:$0xff] %v38_v7 }
   0xd   :  { %43 = vst [vmem:[#allocation5 + $0x8] sm:$0xff] %v39_v8 }
   0xe   :  { %44 = vst [vmem:[#allocation5 + $0x10] sm:$0xff] %v40_v9 }
   0xf   :  { %45 = vst [vmem:[#allocation5 + $0x18] sm:$0xff] %v41_v10 }
  0x10   :  { %58 = dma.vmem_to_hbm [thread:$0]  %s51_s18, 512, %s53_s21, [#allocation4], %s122_s14, %s122_s14, %s123_s15  }
  0x11   :  { %119 = dma.done.wait [#allocation4], 512  }
  0x12   :  { %120 = vsyncadd [#allocation4], 4294966784 }
  0x13   :  { %63 = vsyncpa [#allocation3], 1 }
  0x14   :  { %64 = vsyncpa [#allocation4], 1 }

</bundles_post_ra>
